<compile_context>
chip_gen: v7x
topology: tpu7x:2x2x1
jax: 0.10.0
libtpu: 0.0.40
codegen_flags: <defaults>
</compile_context>

<pallas_src>
import math
import functools

import jax
import jax.numpy as jnp
from jax import lax
from jax.experimental import pallas as pl
from jax.experimental.pallas import tpu as pltpu


def _round_up(v, m):
    return ((v + m - 1) // m) * m


def _input_proj_kernel(x_ref, w_ref, o_ref):
    # x_ref: (bB, N, tT)   input block kept in the PyTorch (N-major) layout
    # w_ref: (N, tD)       projection-weight tile (= PyTorch weight.T tile)
    # o_ref: (bB, tT, tD)  output block
    w = w_ref[...]
    for b in range(x_ref.shape[0]):  # small static unroll over the folded batch block
        # Contract x's N axis (dim 0) with w's N axis (dim 0):
        #   (N, tT) x (N, tD) -> (tT, tD)  ==  x.T @ w, without an explicit transpose.
        o_ref[b] = lax.dot_general(
            x_ref[b], w,
            dimension_numbers=(((0,), (0,)), ((), ())),
            preferred_element_type=jnp.float32,
        ).astype(o_ref.dtype)


@functools.partial(jax.jit, static_argnames=())
def input_projections(x, w_t):
    """x: (B, N, T); w_t: (N, D) (= PyTorch weight.T). Returns (B, T, D)."""
    B, N, T = x.shape
    _, D = w_t.shape

    # ---- tile sizing: lane-dense (multiples of 128) and VMEM-budgeted ----
    tT = min(512, _round_up(T, 128))    # x lane dim / out sublane dim
    tD = min(1024, _round_up(D, 128))   # out lane dim (dense -> unmasked stores)
    T_pad = _round_up(T, tT)
    D_pad = _round_up(D, tD)

    # Fold batch elements into a grid step to amortize per-step overhead at small T/D,
    # while keeping the per-step block comfortably inside scoped VMEM on all chips.
    per_elem_bytes = 4 * (N * tT + tT * tD)
    bB = 1
    for cand in range(min(B, 8), 0, -1):
        if B % cand == 0 and cand * per_elem_bytes <= (4 << 20):
            bB = cand
            break

    x_p = x if T_pad == T else jnp.pad(x, ((0, 0), (0, 0), (0, T_pad - T)))
    w_p = w_t if D_pad == D else jnp.pad(w_t, ((0, 0), (0, D_pad - D)))

    grid = (B // bB, T_pad // tT, D_pad // tD)

    # double-buffered x + out blocks + resident weight tile, plus headroom;
    # capped at 32 MiB so it is safe on v7x (64 MiB physical) and v5e/v6e defaults.
    block_bytes = 4 * (bB * N * tT + bB * tT * tD + N * tD)
    vmem_limit = int(min(32 << 20, max(4 * block_bytes, 8 << 20)))

    out_p = pl.pallas_call(
        _input_proj_kernel,
        out_shape=jax.ShapeDtypeStruct((B, T_pad, D_pad), x.dtype),
        grid=grid,
        in_specs=[
            pl.BlockSpec((bB, N, tT), lambda b, t, d: (b, 0, t)),
            pl.BlockSpec((N, tD), lambda b, t, d: (0, d)),
        ],
        out_specs=pl.BlockSpec((bB, tT, tD), lambda b, t, d: (b, t, d)),
        compiler_params=pltpu.CompilerParams(
            dimension_semantics=("parallel", "parallel", "parallel"),
            vmem_limit_bytes=vmem_limit,
        ),
    )(x_p, w_p)

    return out_p[:, :T, :D]


if __name__ == "__main__":
    # Small shapes consistent with the module's forward: (B, N, T) -> (B, T, D)
    B, N, T, D = 2, 4, 16, 32  # n_codebooks=4, d_model=32

    key = jax.random.PRNGKey(0)
    k_x, k_w = jax.random.split(key)

    x = jax.random.normal(k_x, (B, N, T), dtype=jnp.float32)

    # Deterministic nn.Linear-style init: U(-1/sqrt(in_features), 1/sqrt(in_features)),
    # PyTorch weight shape is (D, N); the kernel consumes its transpose (N, D).
    bound = 1.0 / math.sqrt(N)
    weight = jax.random.uniform(k_w, (D, N), dtype=jnp.float32, minval=-bound, maxval=bound)
    w_t = weight.T  # (N, D)

    out = input_projections(x, w_t)
    out = jax.block_until_ready(out)

    # Reference check in plain JAX (same semantics as the PyTorch module).
    ref = jnp.einsum("bnt,nd->btd", x, w_t)
    assert out.shape == (B, T, D)
    assert jnp.allclose(out, ref, atol=1e-5, rtol=1e-5)

    print("KERNEL_OK")
</pallas_src>

<mosaic_0001>
module attributes {stable_mosaic.version = 11 : i64} {
  func.func @_input_proj_kernel(%arg0: i32, %arg1: i32, %arg2: i32, %arg3: memref<2x4x128xf32, #tpu.memory_space<vmem>>, %arg4: memref<4x128xf32, #tpu.memory_space<vmem>>, %arg5: memref<2x128x128xf32, #tpu.memory_space<vmem>>) attributes {dimension_semantics = [#tpu.dimension_semantics<parallel>, #tpu.dimension_semantics<parallel>, #tpu.dimension_semantics<parallel>], iteration_bounds = array<i64: 1, 1, 1>, scalar_prefetch = 0 : i64, scratch_operands = 0 : i64, tpu.core_type = #tpu.core_type<tc>, window_params = [{transform_indices = @transform_0, window_bounds = array<i64: 2, 4, 128>}, {transform_indices = @transform_1, window_bounds = array<i64: 4, 128>}, {transform_indices = @transform_2, window_bounds = array<i64: 2, 128, 128>}]} {
    %c0 = arith.constant 0 : index
    %c0_0 = arith.constant 0 : index
    %0 = vector.load %arg4[%c0, %c0_0] : memref<4x128xf32, #tpu.memory_space<vmem>>, vector<4x128xf32>
    %c0_1 = arith.constant 0 : index
    %c0_2 = arith.constant 0 : index
    %c0_3 = arith.constant 0 : index
    %1 = vector.load %arg3[%c0_1, %c0_2, %c0_3] : memref<2x4x128xf32, #tpu.memory_space<vmem>>, vector<1x4x128xf32>
    %2 = vector.shape_cast %1 : vector<1x4x128xf32> to vector<4x128xf32>
    %cst = arith.constant dense<0.000000e+00> : vector<128x128xf32>
    %3 = tpu.matmul %2, %0, %cst {dimension_numbers = #tpu.dot_dimension_numbers<[0], [0], [1], [1], [0, 1, 1, 1], [], []>} : vector<4x128xf32>, vector<4x128xf32>, vector<128x128xf32> -> vector<128x128xf32>
    %c0_4 = arith.constant 0 : index
    %c0_5 = arith.constant 0 : index
    %c0_6 = arith.constant 0 : index
    %4 = vector.load %arg5[%c0_4, %c0_5, %c0_6] : memref<2x128x128xf32, #tpu.memory_space<vmem>>, vector<1x128x128xf32>
    %5 = vector.shape_cast %4 : vector<1x128x128xf32> to vector<128x128xf32>
    %6 = vector.shape_cast %3 : vector<128x128xf32> to vector<1x128x128xf32>
    tpu.vector_store %arg5[%c0_4, %c0_5, %c0_6], %6 {strides = array<i32>} : memref<2x128x128xf32, #tpu.memory_space<vmem>>, vector<1x128x128xf32>,
    %c1 = arith.constant 1 : index
    %c0_7 = arith.constant 0 : index
    %c0_8 = arith.constant 0 : index
    %7 = vector.load %arg3[%c1, %c0_7, %c0_8] : memref<2x4x128xf32, #tpu.memory_space<vmem>>, vector<1x4x128xf32>
    %8 = vector.shape_cast %7 : vector<1x4x128xf32> to vector<4x128xf32>
    %cst_9 = arith.constant dense<0.000000e+00> : vector<128x128xf32>
    %9 = tpu.matmul %8, %0, %cst_9 {dimension_numbers = #tpu.dot_dimension_numbers<[0], [0], [1], [1], [0, 1, 1, 1], [], []>} : vector<4x128xf32>, vector<4x128xf32>, vector<128x128xf32> -> vector<128x128xf32>
    %c1_10 = arith.constant 1 : index
    %c0_11 = arith.constant 0 : index
    %c0_12 = arith.constant 0 : index
    %10 = vector.load %arg5[%c1_10, %c0_11, %c0_12] : memref<2x128x128xf32, #tpu.memory_space<vmem>>, vector<1x128x128xf32>
    %11 = vector.shape_cast %10 : vector<1x128x128xf32> to vector<128x128xf32>
    %12 = vector.shape_cast %9 : vector<128x128xf32> to vector<1x128x128xf32>
    tpu.vector_store %arg5[%c1_10, %c0_11, %c0_12], %12 {strides = array<i32>} : memref<2x128x128xf32, #tpu.memory_space<vmem>>, vector<1x128x128xf32>,
    return
  }
  func.func @transform_0(%arg0: i32, %arg1: i32, %arg2: i32) -> (i32, i32, i32) {
    %c0_i32 = arith.constant 0 : i32
    %c0_i32_0 = arith.constant 0 : i32
    return %arg0, %c0_i32, %arg1 : i32, i32, i32
  }
  func.func @transform_1(%arg0: i32, %arg1: i32, %arg2: i32) -> (i32, i32) {
    %c0_i32 = arith.constant 0 : i32
    %c0_i32_0 = arith.constant 0 : i32
    return %c0_i32, %arg2 : i32, i32
  }
  func.func @transform_2(%arg0: i32, %arg1: i32, %arg2: i32) -> (i32, i32, i32) {
    %c0_i32 = arith.constant 0 : i32
    return %arg0, %arg1, %arg2 : i32, i32, i32
  }
}

</mosaic_0001>

<bundles_post_ra>
// kernel: input_projections.1
= control target key start
LH: loop header
LB: loop body
LE: loop exit
PB: predicated region body
PF: predicated region fallthrough
CT: control target
= control target key end

     0   :  { %vm94_vm0 = vcmask 1043456   ;;  %vm45_vm1 = vcmask 31744   ;;  %s797_s0 = inlined_call_operand.vmem [shape: f32[2,4,128], index: 0, kind: input, shape index: {}]   ;;  %s798_s1 = inlined_call_operand.vmem [shape: f32[4,128], index: 1, kind: input, shape index: {}]   ;;  %s799_s2 = inlined_call_operand.vmem [shape: f32[2,128,128], index: 2, kind: output, shape index: {}]  }
   0x1   :  { %v12_v0 = vld [vmem:[%s797_s0] sm:$0xf]  ;;  %v524_v2 = vld [vmem:[%s797_s0 + $0x4] sm:$0xf] }
   0x2   :  { %13 = vxpose.xlu0.b32.start.end [1/1] (short) %v12_v0, 128  ;;  %v11_v1 = vld [vmem:[%s798_s1] sm:$0xf] }
   0x3   :  { %592 = vmatprep.subr.msk.mxu0 %vm94_vm0, %v11_v1  ;;  %618 = vmatprep.subr.msk.mxu1 %vm94_vm0, %v11_v1 }
   0x4   :  { %593 = vmatpush3.msk.msra.mxu0 %vm94_vm0, %v11_v1  ;;  %619 = vmatpush3.msk.msra.mxu1 %vm94_vm0, %v11_v1 }
  0x3f   :  { %261 = vxpose.xlu0.b32.start.end [1/1] (short) %v524_v2, 128 }
  0x82   :  { %v29_v3 = vpop.trf.xlu0 }
  0x83   :  { %594 = vmatprep.mubr.msk.f32.mxu0 %vm45_vm1, %v29_v3 }
  0x86   :  { %v30_v4 = vpop.trf.xlu0 }
  0x87   :  { %595 = vmatmul.mubr.msk.f32.vlgmr.msra.gmra.mrb[0].mxu0 %vm45_vm1, %v30_v4 }
  0x8a   :  { %v31_v5 = vpop.trf.xlu0 }
  0x8b   :  { %597 = vmatprep.mubr.msk.f32.mxu0 %vm45_vm1, %v31_v5 }
  0x8e   :  { %v32_v6 = vpop.trf.xlu0 }
  0x8f   :  { %598 = vmatmul.mubr.msk.f32.gmra.mrb[2].mxu0 %vm45_vm1, %v32_v6 }
  0x92   :  { %v33_v7 = vpop.trf.xlu0 }
  0x93   :  { %600 = vmatprep.mubr.msk.f32.mxu0 %vm45_vm1, %v33_v7 }
  0x96   :  { %v34_v8 = vpop.trf.xlu0 }
  0x97   :  { %601 = vmatmul.mubr.msk.f32.gmra.mrb[4].mxu0 %vm45_vm1, %v34_v8 }
  0x9a   :  { %v35_v9 = vpop.trf.xlu0 }
  0x9b   :  { %603 = vmatprep.mubr.msk.f32.mxu0 %vm45_vm1, %v35_v9 }
  0x9e   :  { %v36_v10 = vpop.trf.xlu0 }
  0x9f   :  { %604 = vmatmul.mubr.msk.f32.gmra.mrb[6].mxu0 %vm45_vm1, %v36_v10 }
  0xa2   :  { %v37_v11 = vpop.trf.xlu0 }
  0xa3   :  { %606 = vmatprep.mubr.msk.f32.mxu0 %vm45_vm1, %v37_v11 }
  0xa6   :  { %v38_v12 = vpop.trf.xlu0 }
  0xa7   :  { %607 = vmatmul.mubr.msk.f32.gmra.mrb[8].mxu0 %vm45_vm1, %v38_v12 }
  0xaa   :  { %v39_v13 = vpop.trf.xlu0 }
  0xab   :  { %609 = vmatprep.mubr.msk.f32.mxu0 %vm45_vm1, %v39_v13 }
  0xae   :  { %v40_v14 = vpop.trf.xlu0 }
  0xaf   :  { %610 = vmatmul.mubr.msk.f32.gmra.mrb[10].mxu0 %vm45_vm1, %v40_v14 }
  0xb2   :  { %v41_v15 = vpop.trf.xlu0 }
  0xb3   :  { %612 = vmatprep.mubr.msk.f32.mxu0 %vm45_vm1, %v41_v15 }
  0xb6   :  { %v42_v16 = vpop.trf.xlu0 }
  0xb7   :  { %613 = vmatmul.mubr.msk.f32.gmra.mrb[12].mxu0 %vm45_vm1, %v42_v16 }
  0xba   :  { %v43_v17 = vpop.trf.xlu0 }
  0xbb   :  { %615 = vmatprep.mubr.msk.f32.mxu0 %vm45_vm1, %v43_v17 }
  0xbe   :  { %v44_v18 = vpop.trf.xlu0 }
  0xbf   :  { %616 = vmatmul.mubr.msk.f32.gmra.mrb[14].mxu0 %vm45_vm1, %v44_v18 }
  0xc2   :  { %v277_v19 = vpop.trf.xlu0 }
  0xc3   :  { %620 = vmatprep.mubr.msk.f32.mxu1 %vm45_vm1, %v277_v19 }
  0xc6   :  { %v278_v20 = vpop.trf.xlu0 }
  0xc7   :  { %621 = vmatmul.mubr.msk.f32.vlgmr.msra.gmra.mrb[0].mxu1 %vm45_vm1, %v278_v20 }
  0xca   :  { %v279_v21 = vpop.trf.xlu0 }
  0xcb   :  { %623 = vmatprep.mubr.msk.f32.mxu1 %vm45_vm1, %v279_v21 }
  0xce   :  { %v280_v22 = vpop.trf.xlu0 }
  0xcf   :  { %624 = vmatmul.mubr.msk.f32.gmra.mrb[2].mxu1 %vm45_vm1, %v280_v22 }
  0xd2   :  { %v281_v23 = vpop.trf.xlu0 }
  0xd3   :  { %626 = vmatprep.mubr.msk.f32.mxu1 %vm45_vm1, %v281_v23 }
  0xd6   :  { %v282_v24 = vpop.trf.xlu0 }
  0xd7   :  { %627 = vmatmul.mubr.msk.f32.gmra.mrb[4].mxu1 %vm45_vm1, %v282_v24 }
  0xda   :  { %v283_v25 = vpop.trf.xlu0 }
  0xdb   :  { %629 = vmatprep.mubr.msk.f32.mxu1 %vm45_vm1, %v283_v25 }
  0xde   :  { %v284_v26 = vpop.trf.xlu0 }
  0xdf   :  { %630 = vmatmul.mubr.msk.f32.gmra.mrb[6].mxu1 %vm45_vm1, %v284_v26 }
  0xe2   :  { %v285_v27 = vpop.trf.xlu0 }
  0xe3   :  { %632 = vmatprep.mubr.msk.f32.mxu1 %vm45_vm1, %v285_v27 }
  0xe6   :  { %v286_v28 = vpop.trf.xlu0 }
  0xe7   :  { %633 = vmatmul.mubr.msk.f32.gmra.mrb[8].mxu1 %vm45_vm1, %v286_v28 }
  0xea   :  { %v287_v29 = vpop.trf.xlu0 }
  0xeb   :  { %635 = vmatprep.mubr.msk.f32.mxu1 %vm45_vm1, %v287_v29 }
  0xee   :  { %v288_v30 = vpop.trf.xlu0 }
  0xef   :  { %636 = vmatmul.mubr.msk.f32.gmra.mrb[10].mxu1 %vm45_vm1, %v288_v30 }
  0xf2   :  { %v289_v31 = vpop.trf.xlu0 }
  0xf3   :  { %638 = vmatprep.mubr.msk.f32.mxu1 %vm45_vm1, %v289_v31 }
  0xf6   :  { %v290_v32 = vpop.trf.xlu0 }
  0xf7   :  { %639 = vmatmul.mubr.msk.f32.gmra.mrb[12].mxu1 %vm45_vm1, %v290_v32 }
  0xfa   :  { %v291_v33 = vpop.trf.xlu0 }
  0xfb   :  { %641 = vmatprep.mubr.msk.f32.mxu1 %vm45_vm1, %v291_v33 }
  0xfe   :  { %v292_v34 = vpop.trf.xlu0 }
  0xff   :  { %642 = vmatmul.mubr.msk.f32.gmra.mrb[14].mxu1 %vm45_vm1, %v292_v34 }
 0x15a   :  { %v596_v35 = vpop.f32.mrb[0].mxu0 }
 0x15b   :  { %244 = vst [vmem:[%s799_s2 + $0x8] sm:$0xff] %v596_v35  ;;  %v164_v36 = vpop.f32.mrb[1].mxu0 }
 0x15c   :  { %243 = vst [vmem:[%s799_s2] sm:$0xff] %v164_v36 }
 0x162   :  { %v599_v37 = vpop.f32.mrb[2].mxu0 }
 0x163   :  { %246 = vst [vmem:[%s799_s2 + $0x18] sm:$0xff] %v599_v37  ;;  %v174_v38 = vpop.f32.mrb[3].mxu0 }
 0x164   :  { %245 = vst [vmem:[%s799_s2 + $0x10] sm:$0xff] %v174_v38 }
 0x16a   :  { %v602_v39 = vpop.f32.mrb[4].mxu0 }
 0x16b   :  { %248 = vst [vmem:[%s799_s2 + $0x28] sm:$0xff] %v602_v39  ;;  %v184_v40 = vpop.f32.mrb[5].mxu0 }
 0x16c   :  { %247 = vst [vmem:[%s799_s2 + $0x20] sm:$0xff] %v184_v40 }
 0x172   :  { %v605_v41 = vpop.f32.mrb[6].mxu0 }
 0x173   :  { %250 = vst [vmem:[%s799_s2 + $0x38] sm:$0xff] %v605_v41  ;;  %v194_v42 = vpop.f32.mrb[7].mxu0 }
 0x174   :  { %249 = vst [vmem:[%s799_s2 + $0x30] sm:$0xff] %v194_v42 }
 0x17a   :  { %v608_v43 = vpop.f32.mrb[8].mxu0 }
 0x17b   :  { %252 = vst [vmem:[%s799_s2 + $0x48] sm:$0xff] %v608_v43  ;;  %v204_v44 = vpop.f32.mrb[9].mxu0 }
 0x17c   :  { %251 = vst [vmem:[%s799_s2 + $0x40] sm:$0xff] %v204_v44 }
 0x182   :  { %v611_v45 = vpop.f32.mrb[10].mxu0 }
 0x183   :  { %254 = vst [vmem:[%s799_s2 + $0x58] sm:$0xff] %v611_v45  ;;  %v214_v46 = vpop.f32.mrb[11].mxu0 }
 0x184   :  { %253 = vst [vmem:[%s799_s2 + $0x50] sm:$0xff] %v214_v46 }
 0x18a   :  { %v614_v47 = vpop.f32.mrb[12].mxu0 }
 0x18b   :  { %256 = vst [vmem:[%s799_s2 + $0x68] sm:$0xff] %v614_v47  ;;  %v224_v48 = vpop.f32.mrb[13].mxu0 }
 0x18c   :  { %255 = vst [vmem:[%s799_s2 + $0x60] sm:$0xff] %v224_v48 }
 0x192   :  { %v617_v49 = vpop.f32.mrb[14].mxu0 }
 0x193   :  { %258 = vst [vmem:[%s799_s2 + $0x78] sm:$0xff] %v617_v49  ;;  %v234_v50 = vpop.f32.mrb[15].mxu0 }
 0x194   :  { %257 = vst [vmem:[%s799_s2 + $0x70] sm:$0xff] %v234_v50 }
 0x19a   :  { %v622_v51 = vpop.f32.mrb[0].mxu1 }
 0x19b   :  { %543 = vst [vmem:[%s799_s2 + $0x88] sm:$0xff] %v622_v51  ;;  %v407_v52 = vpop.f32.mrb[1].mxu1 }
 0x19c   :  { %542 = vst [vmem:[%s799_s2 + $0x80] sm:$0xff] %v407_v52 }
 0x1a2   :  { %v625_v53 = vpop.f32.mrb[2].mxu1 }
 0x1a3   :  { %545 = vst [vmem:[%s799_s2 + $0x98] sm:$0xff] %v625_v53  ;;  %v417_v54 = vpop.f32.mrb[3].mxu1 }
 0x1a4   :  { %544 = vst [vmem:[%s799_s2 + $0x90] sm:$0xff] %v417_v54 }
 0x1aa   :  { %v628_v55 = vpop.f32.mrb[4].mxu1 }
 0x1ab   :  { %547 = vst [vmem:[%s799_s2 + $0xa8] sm:$0xff] %v628_v55  ;;  %v427_v56 = vpop.f32.mrb[5].mxu1 }
 0x1ac   :  { %546 = vst [vmem:[%s799_s2 + $0xa0] sm:$0xff] %v427_v56 }
 0x1b2   :  { %v631_v57 = vpop.f32.mrb[6].mxu1 }
 0x1b3   :  { %549 = vst [vmem:[%s799_s2 + $0xb8] sm:$0xff] %v631_v57  ;;  %v437_v58 = vpop.f32.mrb[7].mxu1 }
 0x1b4   :  { %548 = vst [vmem:[%s799_s2 + $0xb0] sm:$0xff] %v437_v58 }
 0x1ba   :  { %v634_v59 = vpop.f32.mrb[8].mxu1 }
 0x1bb   :  { %551 = vst [vmem:[%s799_s2 + $0xc8] sm:$0xff] %v634_v59  ;;  %v447_v60 = vpop.f32.mrb[9].mxu1 }
 0x1bc   :  { %550 = vst [vmem:[%s799_s2 + $0xc0] sm:$0xff] %v447_v60 }
 0x1c2   :  { %v637_v61 = vpop.f32.mrb[10].mxu1 }
 0x1c3   :  { %553 = vst [vmem:[%s799_s2 + $0xd8] sm:$0xff] %v637_v61  ;;  %v457_v62 = vpop.f32.mrb[11].mxu1 }
 0x1c4   :  { %552 = vst [vmem:[%s799_s2 + $0xd0] sm:$0xff] %v457_v62 }
 0x1ca   :  { %v640_v63 = vpop.f32.mrb[12].mxu1 }
 0x1cb   :  { %555 = vst [vmem:[%s799_s2 + $0xe8] sm:$0xff] %v640_v63  ;;  %v467_v0 = vpop.f32.mrb[13].mxu1 }
 0x1cc   :  { %554 = vst [vmem:[%s799_s2 + $0xe0] sm:$0xff] %v467_v0 }
 0x1d2   :  { %v643_v1 = vpop.f32.mrb[14].mxu1 }
 0x1d3   :  { %557 = vst [vmem:[%s799_s2 + $0xf8] sm:$0xff] %v643_v1  ;;  %v477_v2 = vpop.f32.mrb[15].mxu1 }
 0x1d4   :  { %556 = vst [vmem:[%s799_s2 + $0xf0] sm:$0xff] %v477_v2 }

</bundles_post_ra>
